<compile_context>
chip_gen: v5e
topology: v5e:2x2
jax: 0.10.0
libtpu: 0.0.40
codegen_flags: <defaults>
</compile_context>

<pallas_src>
import functools

import jax
import jax.numpy as jnp
from jax import lax
from jax.experimental import pallas as pl
from jax.experimental.pallas import tpu as pltpu

EPS = 1e-5                      # nn.BatchNorm1d default eps
MXU_DTYPE = jnp.bfloat16        # matmul operand dtype (f32 accumulation)


def _res_block_kernel(x_ref, w1_ref, g1_ref, be1_ref, w2_ref, g2_ref, be2_ref,
                      out_ref, *, K, pad, L, N):
    """One grid step == one residual layer:
        tmp = relu(bn1(conv1(x)))
        x   = relu(bn2(conv2(tmp)) + x)
    The output block is mapped to the same tile at every grid step, so x stays
    resident in VMEM across all layers.
    """
    layer = pl.program_id(0)

    # Layer 0: seed the resident output block with the input activation.
    @pl.when(layer == 0)
    def _():
        out_ref[...] = x_ref[...]

    x = out_ref[...]                               # (N, C, L)  float32

    w1 = w1_ref[0]                                 # (2C, K*C)     bf16
    w2 = w2_ref[0]                                 # (C, K*2C)     bf16
    g1, be1 = g1_ref[0], be1_ref[0]                # (2C, 1)       f32
    g2, be2 = g2_ref[0], be2_ref[0]                # (C, 1)        f32

    def conv(h, w):
        """'same' 1-D conv (stride 1) as a single im2col matmul per batch
        element.  h: (N, Cin, L) f32, w: (Cout, K*Cin) bf16 -> (N, Cout, L)."""
        cin = h.shape[1]
        outs = []
        for n in range(N):                         # static, small batch
            hn = h[n]                              # (Cin, L)
            if pad > 0:
                z = jnp.zeros((cin, pad), jnp.float32)
                hp = jnp.concatenate([z, hn, z], axis=-1)       # (Cin, L+2p)
            else:
                hp = hn
            # im2col slab: stack the K shifted windows on the sublane axis.
            slab = jnp.concatenate([hp[:, k:k + L] for k in range(K)],
                                   axis=0)                       # (K*Cin, L)
            outs.append(jnp.dot(w, slab.astype(w.dtype),
                                preferred_element_type=jnp.float32))
        return jnp.stack(outs, axis=0)             # (N, Cout, L) f32

    def bn_relu(h, gamma, beta, residual=None):
        """Training-mode BatchNorm1d (biased stats over N*L per channel),
        one-pass variance, gamma folded into a single scale, then ReLU."""
        inv_cnt = 1.0 / float(N * L)
        s = jnp.sum(jnp.sum(h, axis=2, keepdims=True), axis=0, keepdims=True)
        s2 = jnp.sum(jnp.sum(h * h, axis=2, keepdims=True), axis=0,
                     keepdims=True)
        m = s * inv_cnt                            # (1, Co, 1)
        var = s2 * inv_cnt - m * m
        scale = gamma[None] * lax.rsqrt(var + EPS)
        shift = beta[None] - m * scale
        y = h * scale + shift
        if residual is not None:
            y = y + residual
        return jnp.maximum(y, 0.0)

    tmp = bn_relu(conv(x, w1), g1, be1)                      # (N, 2C, L)
    out_ref[...] = bn_relu(conv(tmp, w2), g2, be2, residual=x)


def res_conv1d_block(x_ncl, params, kernel_size, stride, layer_num):
    """Forward pass of resConv1dBlock.  x_ncl: (N, C, L) torch NCL layout."""
    # TODO(synk): stride != 1 (or even kernel_size) changes the conv output
    # length and the residual add in the PyTorch module would fail; only the
    # shape-consistent configuration (stride=1, odd K) is supported.
    assert stride == 1 and kernel_size % 2 == 1
    K = kernel_size
    pad = (K - 1) // 2
    N, C, L = x_ncl.shape
    Cmid = 2 * C

    # Fold each layer's conv weight (K, Cin, Cout) into the im2col layout
    # (Cout, K*Cin) and stack all layers on a leading axis so one pallas_call
    # iterates layers on an 'arbitrary' grid axis (weights stream/double-
    # buffer per layer while x stays in VMEM).
    w1 = jnp.stack([jnp.transpose(p["w1"], (2, 0, 1)).reshape(Cmid, K * C)
                    for p in params]).astype(MXU_DTYPE)
    w2 = jnp.stack([jnp.transpose(p["w2"], (2, 0, 1)).reshape(C, K * Cmid)
                    for p in params]).astype(MXU_DTYPE)
    g1 = jnp.stack([jnp.reshape(p["g1"], (Cmid, 1)) for p in params]
                   ).astype(jnp.float32)
    be1 = jnp.stack([jnp.reshape(p["be1"], (Cmid, 1)) for p in params]
                    ).astype(jnp.float32)
    g2 = jnp.stack([jnp.reshape(p["g2"], (C, 1)) for p in params]
                   ).astype(jnp.float32)
    be2 = jnp.stack([jnp.reshape(p["be2"], (C, 1)) for p in params]
                    ).astype(jnp.float32)
    # NOTE: conv biases b1/b2 are intentionally not passed to the kernel:
    # training-mode BatchNorm subtracts the per-channel batch mean, which
    # cancels a per-channel constant exactly.

    x = x_ncl.astype(jnp.float32)

    kern = functools.partial(_res_block_kernel, K=K, pad=pad, L=L, N=N)
    # TODO(synk): for large N / L, move the batch (or L tiles) onto its own
    # grid axis with sum/sumsq BN accumulation so the per-step block stays
    # within the v7x 64 MiB VMEM budget and the two TensorCores can be used.
    out = pl.pallas_call(
        kern,
        out_shape=jax.ShapeDtypeStruct((N, C, L), jnp.float32),
        grid=(layer_num,),
        in_specs=[
            pl.BlockSpec((N, C, L), lambda i: (0, 0, 0)),          # x (layer 0)
            pl.BlockSpec((1, Cmid, K * C), lambda i: (i, 0, 0)),   # W1[i]
            pl.BlockSpec((1, Cmid, 1), lambda i: (i, 0, 0)),       # gamma1[i]
            pl.BlockSpec((1, Cmid, 1), lambda i: (i, 0, 0)),       # beta1[i]
            pl.BlockSpec((1, C, K * Cmid), lambda i: (i, 0, 0)),   # W2[i]
            pl.BlockSpec((1, C, 1), lambda i: (i, 0, 0)),          # gamma2[i]
            pl.BlockSpec((1, C, 1), lambda i: (i, 0, 0)),          # beta2[i]
        ],
        out_specs=pl.BlockSpec((N, C, L), lambda i: (0, 0, 0)),    # resident
        compiler_params=pltpu.CompilerParams(
            dimension_semantics=("arbitrary",)),
    )(x, w1, g1, be1, w2, g2, be2)
    return out


def ref_forward(x_ncl, params, kernel_size, layer_num):
    """Pure-JAX reference (conv1d + bias / train-mode BN / relu).  The matmul
    operands are cast to MXU_DTYPE to mirror the kernel's MXU precision."""
    pad = (kernel_size - 1) // 2
    x = jnp.transpose(x_ncl, (0, 2, 1)).astype(jnp.float32)   # (N, L, C)
    N, L, _ = x.shape

    def conv(xin, w, b):
        K, Ci, Co = w.shape
        xp = jnp.pad(xin, ((0, 0), (pad, pad), (0, 0)))
        out = jnp.zeros((N, L, Co), jnp.float32)
        for k in range(K):
            out = out + jnp.einsum(
                'nlc,cd->nld',
                xp[:, k:k + L, :].astype(MXU_DTYPE),
                w[k].astype(MXU_DTYPE),
                preferred_element_type=jnp.float32)
        return out + jnp.reshape(b, (1, 1, Co))

    def bn(y, g, be):
        m = jnp.mean(y, axis=(0, 1), keepdims=True)
        v = jnp.mean((y - m) ** 2, axis=(0, 1), keepdims=True)
        return ((y - m) / jnp.sqrt(v + EPS) * jnp.reshape(g, (1, 1, -1))
                + jnp.reshape(be, (1, 1, -1)))

    for i in range(layer_num):
        p = params[i]
        tmp = jax.nn.relu(bn(conv(x, p["w1"], p["b1"]), p["g1"], p["be1"]))
        x = jax.nn.relu(bn(conv(tmp, p["w2"], p["b2"]), p["g2"], p["be2"]) + x)
    return jnp.transpose(x, (0, 2, 1))


if __name__ == "__main__":
    in_channels, kernel_size, stride, layer_num = 8, 3, 1, 2
    N, L = 2, 16
    Cmid = 2 * in_channels

    key = jax.random.PRNGKey(0)
    keys = jax.random.split(key, 1 + 4 * layer_num)
    x = jax.random.normal(keys[0], (N, in_channels, L), jnp.float32)

    params = []
    for i in range(layer_num):
        k1, k2, k3, k4 = keys[1 + 4 * i: 1 + 4 * (i + 1)]
        params.append(dict(
            # conv weights stored as (K, Cin, Cout) (== torch (Cout,Cin,K) transposed)
            w1=0.2 * jax.random.normal(k1, (kernel_size, in_channels, Cmid),
                                       jnp.float32),
            b1=0.1 * jax.random.normal(k2, (Cmid,), jnp.float32),
            g1=jnp.ones((Cmid,), jnp.float32),      # BN gamma default = 1
            be1=jnp.zeros((Cmid,), jnp.float32),    # BN beta default = 0
            w2=0.2 * jax.random.normal(k3, (kernel_size, Cmid, in_channels),
                                       jnp.float32),
            b2=0.1 * jax.random.normal(k4, (in_channels,), jnp.float32),
            g2=jnp.ones((in_channels,), jnp.float32),
            be2=jnp.zeros((in_channels,), jnp.float32),
        ))

    out = res_conv1d_block(x, params, kernel_size, stride, layer_num)
    out = jax.block_until_ready(out)

    ref = ref_forward(x, params, kernel_size, layer_num)
    assert out.shape == (N, in_channels, L)
    assert jnp.allclose(out, ref, atol=1e-2, rtol=1e-2), \
        f"max abs diff = {jnp.max(jnp.abs(out - ref))}"
    print("KERNEL_OK")
</pallas_src>

<mosaic_0001>
module attributes {stable_mosaic.version = 11 : i64} {
  func.func @_res_block_kernel(%arg0: i32, %arg1: memref<2x8x16xf32, #tpu.memory_space<vmem>>, %arg2: memref<1x16x24xbf16, #tpu.memory_space<vmem>>, %arg3: memref<1x16x1xf32, #tpu.memory_space<vmem>>, %arg4: memref<1x16x1xf32, #tpu.memory_space<vmem>>, %arg5: memref<1x8x48xbf16, #tpu.memory_space<vmem>>, %arg6: memref<1x8x1xf32, #tpu.memory_space<vmem>>, %arg7: memref<1x8x1xf32, #tpu.memory_space<vmem>>, %arg8: memref<2x8x16xf32, #tpu.memory_space<vmem>>) attributes {dimension_semantics = [#tpu.dimension_semantics<arbitrary>], iteration_bounds = array<i64: 2>, scalar_prefetch = 0 : i64, scratch_operands = 0 : i64, tpu.core_type = #tpu.core_type<tc>, window_params = [{pipeline_mode = #tpu.pipeline_mode<synchronous>, transform_indices = @transform_0, window_bounds = array<i64: 2, 8, 16>}, {transform_indices = @transform_1, window_bounds = array<i64: 1, 16, 24>}, {transform_indices = @transform_2, window_bounds = array<i64: 1, 16, 1>}, {transform_indices = @transform_3, window_bounds = array<i64: 1, 16, 1>}, {transform_indices = @transform_4, window_bounds = array<i64: 1, 8, 48>}, {transform_indices = @transform_5, window_bounds = array<i64: 1, 8, 1>}, {transform_indices = @transform_6, window_bounds = array<i64: 1, 8, 1>}, {pipeline_mode = #tpu.pipeline_mode<synchronous>, transform_indices = @transform_7, window_bounds = array<i64: 2, 8, 16>}]} {
    %c0_i32 = arith.constant 0 : i32
    %0 = arith.cmpi eq, %arg0, %c0_i32 : i32
    %1 = arith.extui %0 : i1 to i32
    %c0_i32_0 = arith.constant 0 : i32
    %2 = arith.cmpi ne, %1, %c0_i32_0 : i32
    scf.if %2 {
      %c0_47 = arith.constant 0 : index
      %c0_48 = arith.constant 0 : index
      %c0_49 = arith.constant 0 : index
      %122 = vector.load %arg1[%c0_47, %c0_48, %c0_49] : memref<2x8x16xf32, #tpu.memory_space<vmem>>, vector<2x8x16xf32>
      %c0_50 = arith.constant 0 : index
      %c0_51 = arith.constant 0 : index
      %c0_52 = arith.constant 0 : index
      %123 = vector.load %arg8[%c0_50, %c0_51, %c0_52] : memref<2x8x16xf32, #tpu.memory_space<vmem>>, vector<2x8x16xf32>
      tpu.vector_store %arg8[%c0_50, %c0_51, %c0_52], %122 {strides = array<i32>} : memref<2x8x16xf32, #tpu.memory_space<vmem>>, vector<2x8x16xf32>,
    } else {
    }
    %c0 = arith.constant 0 : index
    %c0_1 = arith.constant 0 : index
    %c0_2 = arith.constant 0 : index
    %3 = vector.load %arg8[%c0, %c0_1, %c0_2] : memref<2x8x16xf32, #tpu.memory_space<vmem>>, vector<2x8x16xf32>
    %c0_3 = arith.constant 0 : index
    %c0_4 = arith.constant 0 : index
    %c0_5 = arith.constant 0 : index
    %4 = vector.load %arg2[%c0_3, %c0_4, %c0_5] : memref<1x16x24xbf16, #tpu.memory_space<vmem>>, vector<1x16x24xbf16>
    %5 = vector.shape_cast %4 : vector<1x16x24xbf16> to vector<16x24xbf16>
    %c0_6 = arith.constant 0 : index
    %c0_7 = arith.constant 0 : index
    %c0_8 = arith.constant 0 : index
    %6 = vector.load %arg5[%c0_6, %c0_7, %c0_8] : memref<1x8x48xbf16, #tpu.memory_space<vmem>>, vector<1x8x48xbf16>
    %7 = vector.shape_cast %6 : vector<1x8x48xbf16> to vector<8x48xbf16>
    %c0_9 = arith.constant 0 : index
    %c0_10 = arith.constant 0 : index
    %c0_11 = arith.constant 0 : index
    %8 = vector.load %arg3[%c0_9, %c0_10, %c0_11] : memref<1x16x1xf32, #tpu.memory_space<vmem>>, vector<1x16x1xf32>
    %9 = vector.shape_cast %8 : vector<1x16x1xf32> to vector<16x1xf32>
    %c0_12 = arith.constant 0 : index
    %c0_13 = arith.constant 0 : index
    %c0_14 = arith.constant 0 : index
    %10 = vector.load %arg4[%c0_12, %c0_13, %c0_14] : memref<1x16x1xf32, #tpu.memory_space<vmem>>, vector<1x16x1xf32>
    %11 = vector.shape_cast %10 : vector<1x16x1xf32> to vector<16x1xf32>
    %c0_15 = arith.constant 0 : index
    %c0_16 = arith.constant 0 : index
    %c0_17 = arith.constant 0 : index
    %12 = vector.load %arg6[%c0_15, %c0_16, %c0_17] : memref<1x8x1xf32, #tpu.memory_space<vmem>>, vector<1x8x1xf32>
    %13 = vector.shape_cast %12 : vector<1x8x1xf32> to vector<8x1xf32>
    %c0_18 = arith.constant 0 : index
    %c0_19 = arith.constant 0 : index
    %c0_20 = arith.constant 0 : index
    %14 = vector.load %arg7[%c0_18, %c0_19, %c0_20] : memref<1x8x1xf32, #tpu.memory_space<vmem>>, vector<1x8x1xf32>
    %15 = vector.shape_cast %14 : vector<1x8x1xf32> to vector<8x1xf32>
    %16 = vector.extract_strided_slice %3 {offsets = [0, 0, 0], sizes = [1, 8, 16], strides = [1, 1, 1]} : vector<2x8x16xf32> to vector<1x8x16xf32>
    %17 = vector.shape_cast %16 : vector<1x8x16xf32> to vector<8x16xf32>
    %cst = arith.constant 0.000000e+00 : f32
    %18 = vector.broadcast %cst : f32 to vector<8x1xf32>
    %19 = tpu.concatenate %18, %17, %18 in 1 : vector<8x1xf32>, vector<8x16xf32>, vector<8x1xf32> -> vector<8x18xf32>
    %20 = vector.extract_strided_slice %19 {offsets = [0, 0], sizes = [8, 16], strides = [1, 1]} : vector<8x18xf32> to vector<8x16xf32>
    %21 = vector.extract_strided_slice %19 {offsets = [0, 1], sizes = [8, 16], strides = [1, 1]} : vector<8x18xf32> to vector<8x16xf32>
    %22 = vector.extract_strided_slice %19 {offsets = [0, 2], sizes = [8, 16], strides = [1, 1]} : vector<8x18xf32> to vector<8x16xf32>
    %23 = tpu.concatenate %20, %21, %22 in 0 : vector<8x16xf32>, vector<8x16xf32>, vector<8x16xf32> -> vector<24x16xf32>
    %24 = arith.truncf %23 : vector<24x16xf32> to vector<24x16xbf16>
    %cst_21 = arith.constant dense<0.000000e+00> : vector<16x16xf32>
    %25 = tpu.matmul %5, %24, %cst_21 {dimension_numbers = #tpu.dot_dimension_numbers<[1], [0], [0], [1], [0, 0, 1, 1], [], []>} : vector<16x24xbf16>, vector<24x16xbf16>, vector<16x16xf32> -> vector<16x16xf32>
    %26 = vector.extract_strided_slice %3 {offsets = [1, 0, 0], sizes = [1, 8, 16], strides = [1, 1, 1]} : vector<2x8x16xf32> to vector<1x8x16xf32>
    %27 = vector.shape_cast %26 : vector<1x8x16xf32> to vector<8x16xf32>
    %cst_22 = arith.constant 0.000000e+00 : f32
    %28 = vector.broadcast %cst_22 : f32 to vector<8x1xf32>
    %29 = tpu.concatenate %28, %27, %28 in 1 : vector<8x1xf32>, vector<8x16xf32>, vector<8x1xf32> -> vector<8x18xf32>
    %30 = vector.extract_strided_slice %29 {offsets = [0, 0], sizes = [8, 16], strides = [1, 1]} : vector<8x18xf32> to vector<8x16xf32>
    %31 = vector.extract_strided_slice %29 {offsets = [0, 1], sizes = [8, 16], strides = [1, 1]} : vector<8x18xf32> to vector<8x16xf32>
    %32 = vector.extract_strided_slice %29 {offsets = [0, 2], sizes = [8, 16], strides = [1, 1]} : vector<8x18xf32> to vector<8x16xf32>
    %33 = tpu.concatenate %30, %31, %32 in 0 : vector<8x16xf32>, vector<8x16xf32>, vector<8x16xf32> -> vector<24x16xf32>
    %34 = arith.truncf %33 : vector<24x16xf32> to vector<24x16xbf16>
    %cst_23 = arith.constant dense<0.000000e+00> : vector<16x16xf32>
    %35 = tpu.matmul %5, %34, %cst_23 {dimension_numbers = #tpu.dot_dimension_numbers<[1], [0], [0], [1], [0, 0, 1, 1], [], []>} : vector<16x24xbf16>, vector<24x16xbf16>, vector<16x16xf32> -> vector<16x16xf32>
    %36 = vector.shape_cast %25 : vector<16x16xf32> to vector<1x16x16xf32>
    %37 = vector.shape_cast %35 : vector<16x16xf32> to vector<1x16x16xf32>
    %38 = tpu.concatenate %36, %37 in 0 : vector<1x16x16xf32>, vector<1x16x16xf32> -> vector<2x16x16xf32>
    %cst_24 = arith.constant dense<0.000000e+00> : vector<2x16xf32>
    %39 = vector.multi_reduction <add>, %38, %cst_24 [2] : vector<2x16x16xf32> to vector<2x16xf32>
    %40 = vector.shape_cast %39 : vector<2x16xf32> to vector<2x16x1xf32>
    %cst_25 = arith.constant dense<0.000000e+00> : vector<16x1xf32>
    %41 = vector.multi_reduction <add>, %40, %cst_25 [0] : vector<2x16x1xf32> to vector<16x1xf32>
    %42 = vector.shape_cast %41 : vector<16x1xf32> to vector<1x16x1xf32>
    %43 = arith.mulf %38, %38 : vector<2x16x16xf32>
    %cst_26 = arith.constant dense<0.000000e+00> : vector<2x16xf32>
    %44 = vector.multi_reduction <add>, %43, %cst_26 [2] : vector<2x16x16xf32> to vector<2x16xf32>
    %45 = vector.shape_cast %44 : vector<2x16xf32> to vector<2x16x1xf32>
    %cst_27 = arith.constant dense<0.000000e+00> : vector<16x1xf32>
    %46 = vector.multi_reduction <add>, %45, %cst_27 [0] : vector<2x16x1xf32> to vector<16x1xf32>
    %47 = vector.shape_cast %46 : vector<16x1xf32> to vector<1x16x1xf32>
    %cst_28 = arith.constant 3.125000e-02 : f32
    %48 = vector.broadcast %cst_28 : f32 to vector<1x16x1xf32>
    %49 = arith.mulf %42, %48 : vector<1x16x1xf32>
    %cst_29 = arith.constant 3.125000e-02 : f32
    %50 = vector.broadcast %cst_29 : f32 to vector<1x16x1xf32>
    %51 = arith.mulf %47, %50 : vector<1x16x1xf32>
    %52 = arith.mulf %49, %49 : vector<1x16x1xf32>
    %53 = arith.subf %51, %52 : vector<1x16x1xf32>
    %54 = vector.shape_cast %9 : vector<16x1xf32> to vector<1x16x1xf32>
    %cst_30 = arith.constant 9.99999974E-6 : f32
    %55 = vector.broadcast %cst_30 : f32 to vector<1x16x1xf32>
    %56 = arith.addf %53, %55 : vector<1x16x1xf32>
    %57 = math.rsqrt %56 : vector<1x16x1xf32>
    %58 = arith.mulf %54, %57 : vector<1x16x1xf32>
    %59 = vector.shape_cast %11 : vector<16x1xf32> to vector<1x16x1xf32>
    %60 = arith.mulf %49, %58 : vector<1x16x1xf32>
    %61 = arith.subf %59, %60 : vector<1x16x1xf32>
    %62 = vector.broadcast %58 : vector<1x16x1xf32> to vector<2x16x16xf32>
    %63 = arith.mulf %38, %62 : vector<2x16x16xf32>
    %64 = vector.broadcast %61 : vector<1x16x1xf32> to vector<2x16x16xf32>
    %65 = arith.addf %63, %64 : vector<2x16x16xf32>
    %cst_31 = arith.constant 0.000000e+00 : f32
    %66 = vector.broadcast %cst_31 : f32 to vector<2x16x16xf32>
    %67 = arith.maximumf %65, %66 : vector<2x16x16xf32>
    %68 = vector.extract_strided_slice %67 {offsets = [0, 0, 0], sizes = [1, 16, 16], strides = [1, 1, 1]} : vector<2x16x16xf32> to vector<1x16x16xf32>
    %69 = vector.shape_cast %68 : vector<1x16x16xf32> to vector<16x16xf32>
    %cst_32 = arith.constant 0.000000e+00 : f32
    %70 = vector.broadcast %cst_32 : f32 to vector<16x1xf32>
    %71 = tpu.concatenate %70, %69, %70 in 1 : vector<16x1xf32>, vector<16x16xf32>, vector<16x1xf32> -> vector<16x18xf32>
    %72 = vector.extract_strided_slice %71 {offsets = [0, 0], sizes = [16, 16], strides = [1, 1]} : vector<16x18xf32> to vector<16x16xf32>
    %73 = vector.extract_strided_slice %71 {offsets = [0, 1], sizes = [16, 16], strides = [1, 1]} : vector<16x18xf32> to vector<16x16xf32>
    %74 = vector.extract_strided_slice %71 {offsets = [0, 2], sizes = [16, 16], strides = [1, 1]} : vector<16x18xf32> to vector<16x16xf32>
    %75 = tpu.concatenate %72, %73, %74 in 0 : vector<16x16xf32>, vector<16x16xf32>, vector<16x16xf32> -> vector<48x16xf32>
    %76 = arith.truncf %75 : vector<48x16xf32> to vector<48x16xbf16>
    %cst_33 = arith.constant dense<0.000000e+00> : vector<8x16xf32>
    %77 = tpu.matmul %7, %76, %cst_33 {dimension_numbers = #tpu.dot_dimension_numbers<[1], [0], [0], [1], [0, 0, 1, 1], [], []>} : vector<8x48xbf16>, vector<48x16xbf16>, vector<8x16xf32> -> vector<8x16xf32>
    %78 = vector.extract_strided_slice %67 {offsets = [1, 0, 0], sizes = [1, 16, 16], strides = [1, 1, 1]} : vector<2x16x16xf32> to vector<1x16x16xf32>
    %79 = vector.shape_cast %78 : vector<1x16x16xf32> to vector<16x16xf32>
    %cst_34 = arith.constant 0.000000e+00 : f32
    %80 = vector.broadcast %cst_34 : f32 to vector<16x1xf32>
    %81 = tpu.concatenate %80, %79, %80 in 1 : vector<16x1xf32>, vector<16x16xf32>, vector<16x1xf32> -> vector<16x18xf32>
    %82 = vector.extract_strided_slice %81 {offsets = [0, 0], sizes = [16, 16], strides = [1, 1]} : vector<16x18xf32> to vector<16x16xf32>
    %83 = vector.extract_strided_slice %81 {offsets = [0, 1], sizes = [16, 16], strides = [1, 1]} : vector<16x18xf32> to vector<16x16xf32>
    %84 = vector.extract_strided_slice %81 {offsets = [0, 2], sizes = [16, 16], strides = [1, 1]} : vector<16x18xf32> to vector<16x16xf32>
    %85 = tpu.concatenate %82, %83, %84 in 0 : vector<16x16xf32>, vector<16x16xf32>, vector<16x16xf32> -> vector<48x16xf32>
    %86 = arith.truncf %85 : vector<48x16xf32> to vector<48x16xbf16>
    %cst_35 = arith.constant dense<0.000000e+00> : vector<8x16xf32>
    %87 = tpu.matmul %7, %86, %cst_35 {dimension_numbers = #tpu.dot_dimension_numbers<[1], [0], [0], [1], [0, 0, 1, 1], [], []>} : vector<8x48xbf16>, vector<48x16xbf16>, vector<8x16xf32> -> vector<8x16xf32>
    %88 = vector.shape_cast %77 : vector<8x16xf32> to vector<1x8x16xf32>
    %89 = vector.shape_cast %87 : vector<8x16xf32> to vector<1x8x16xf32>
    %90 = tpu.concatenate %88, %89 in 0 : vector<1x8x16xf32>, vector<1x8x16xf32> -> vector<2x8x16xf32>
    %cst_36 = arith.constant dense<0.000000e+00> : vector<2x8xf32>
    %91 = vector.multi_reduction <add>, %90, %cst_36 [2] : vector<2x8x16xf32> to vector<2x8xf32>
    %92 = vector.shape_cast %91 : vector<2x8xf32> to vector<2x8x1xf32>
    %cst_37 = arith.constant dense<0.000000e+00> : vector<8x1xf32>
    %93 = vector.multi_reduction <add>, %92, %cst_37 [0] : vector<2x8x1xf32> to vector<8x1xf32>
    %94 = vector.shape_cast %93 : vector<8x1xf32> to vector<1x8x1xf32>
    %95 = arith.mulf %90, %90 : vector<2x8x16xf32>
    %cst_38 = arith.constant dense<0.000000e+00> : vector<2x8xf32>
    %96 = vector.multi_reduction <add>, %95, %cst_38 [2] : vector<2x8x16xf32> to vector<2x8xf32>
    %97 = vector.shape_cast %96 : vector<2x8xf32> to vector<2x8x1xf32>
    %cst_39 = arith.constant dense<0.000000e+00> : vector<8x1xf32>
    %98 = vector.multi_reduction <add>, %97, %cst_39 [0] : vector<2x8x1xf32> to vector<8x1xf32>
    %99 = vector.shape_cast %98 : vector<8x1xf32> to vector<1x8x1xf32>
    %cst_40 = arith.constant 3.125000e-02 : f32
    %100 = vector.broadcast %cst_40 : f32 to vector<1x8x1xf32>
    %101 = arith.mulf %94, %100 : vector<1x8x1xf32>
    %cst_41 = arith.constant 3.125000e-02 : f32
    %102 = vector.broadcast %cst_41 : f32 to vector<1x8x1xf32>
    %103 = arith.mulf %99, %102 : vector<1x8x1xf32>
    %104 = arith.mulf %101, %101 : vector<1x8x1xf32>
    %105 = arith.subf %103, %104 : vector<1x8x1xf32>
    %106 = vector.shape_cast %13 : vector<8x1xf32> to vector<1x8x1xf32>
    %cst_42 = arith.constant 9.99999974E-6 : f32
    %107 = vector.broadcast %cst_42 : f32 to vector<1x8x1xf32>
    %108 = arith.addf %105, %107 : vector<1x8x1xf32>
    %109 = math.rsqrt %108 : vector<1x8x1xf32>
    %110 = arith.mulf %106, %109 : vector<1x8x1xf32>
    %111 = vector.shape_cast %15 : vector<8x1xf32> to vector<1x8x1xf32>
    %112 = arith.mulf %101, %110 : vector<1x8x1xf32>
    %113 = arith.subf %111, %112 : vector<1x8x1xf32>
    %114 = vector.broadcast %110 : vector<1x8x1xf32> to vector<2x8x16xf32>
    %115 = arith.mulf %90, %114 : vector<2x8x16xf32>
    %116 = vector.broadcast %113 : vector<1x8x1xf32> to vector<2x8x16xf32>
    %117 = arith.addf %115, %116 : vector<2x8x16xf32>
    %118 = arith.addf %117, %3 : vector<2x8x16xf32>
    %cst_43 = arith.constant 0.000000e+00 : f32
    %119 = vector.broadcast %cst_43 : f32 to vector<2x8x16xf32>
    %120 = arith.maximumf %118, %119 : vector<2x8x16xf32>
    %c0_44 = arith.constant 0 : index
    %c0_45 = arith.constant 0 : index
    %c0_46 = arith.constant 0 : index
    %121 = vector.load %arg8[%c0_44, %c0_45, %c0_46] : memref<2x8x16xf32, #tpu.memory_space<vmem>>, vector<2x8x16xf32>
    tpu.vector_store %arg8[%c0_44, %c0_45, %c0_46], %120 {strides = array<i32>} : memref<2x8x16xf32, #tpu.memory_space<vmem>>, vector<2x8x16xf32>,
    return
  }
  func.func @transform_0(%arg0: i32) -> (i32, i32, i32) {
    %c0_i32 = arith.constant 0 : i32
    %c0_i32_0 = arith.constant 0 : i32
    %c0_i32_1 = arith.constant 0 : i32
    %c0_i32_2 = arith.constant 0 : i32
    return %c0_i32, %c0_i32_0, %c0_i32_1 : i32, i32, i32
  }
  func.func @transform_1(%arg0: i32) -> (i32, i32, i32) {
    %c0_i32 = arith.constant 0 : i32
    %c0_i32_0 = arith.constant 0 : i32
    %c0_i32_1 = arith.constant 0 : i32
    return %arg0, %c0_i32, %c0_i32_0 : i32, i32, i32
  }
  func.func @transform_2(%arg0: i32) -> (i32, i32, i32) {
    %c0_i32 = arith.constant 0 : i32
    %c0_i32_0 = arith.constant 0 : i32
    %c0_i32_1 = arith.constant 0 : i32
    return %arg0, %c0_i32, %c0_i32_0 : i32, i32, i32
  }
  func.func @transform_3(%arg0: i32) -> (i32, i32, i32) {
    %c0_i32 = arith.constant 0 : i32
    %c0_i32_0 = arith.constant 0 : i32
    %c0_i32_1 = arith.constant 0 : i32
    return %arg0, %c0_i32, %c0_i32_0 : i32, i32, i32
  }
  func.func @transform_4(%arg0: i32) -> (i32, i32, i32) {
    %c0_i32 = arith.constant 0 : i32
    %c0_i32_0 = arith.constant 0 : i32
    %c0_i32_1 = arith.constant 0 : i32
    return %arg0, %c0_i32, %c0_i32_0 : i32, i32, i32
  }
  func.func @transform_5(%arg0: i32) -> (i32, i32, i32) {
    %c0_i32 = arith.constant 0 : i32
    %c0_i32_0 = arith.constant 0 : i32
    %c0_i32_1 = arith.constant 0 : i32
    return %arg0, %c0_i32, %c0_i32_0 : i32, i32, i32
  }
  func.func @transform_6(%arg0: i32) -> (i32, i32, i32) {
    %c0_i32 = arith.constant 0 : i32
    %c0_i32_0 = arith.constant 0 : i32
    %c0_i32_1 = arith.constant 0 : i32
    return %arg0, %c0_i32, %c0_i32_0 : i32, i32, i32
  }
  func.func @transform_7(%arg0: i32) -> (i32, i32, i32) {
    %c0_i32 = arith.constant 0 : i32
    %c0_i32_0 = arith.constant 0 : i32
    %c0_i32_1 = arith.constant 0 : i32
    %c0_i32_2 = arith.constant 0 : i32
    return %c0_i32, %c0_i32_0, %c0_i32_1 : i32, i32, i32
  }
}

</mosaic_0001>

<bundles_post_ra>
// kernel: tpu_custom_call.1
= control target key start
LH: loop header
LB: loop body
LE: loop exit
PB: predicated region body
PF: predicated region fallthrough
CT: control target
= control target key end

     0   :  { %12 = vsyncpa [#allocation3], 0  ;;  %s1012_s24 = smov 0   ;;  %s1157_s0 = inlined_call_operand.vmem [shape: f32[2,8,16], index: 0, kind: input, shape index: {}]   ;;  %s1158_s1 = inlined_call_operand.vmem [shape: bf16[2,16,24], index: 1, kind: input, shape index: {}]   ;;  %s1159_s2 = inlined_call_operand.vmem [shape: f32[2,16,1], index: 2, kind: input, shape index: {}]   ;;  %s1160_s3 = inlined_call_operand.vmem [shape: f32[2,16,1], index: 3, kind: input, shape index: {}]   ;;  %s1161_s4 = inlined_call_operand.vmem [shape: bf16[2,8,48], index: 4, kind: input, shape index: {}]   ;;  %s1162_s5 = inlined_call_operand.vmem [shape: f32[2,8,1], index: 5, kind: input, shape index: {}]   ;;  %s1163_s6 = inlined_call_operand.vmem [shape: f32[2,8,1], index: 6, kind: input, shape index: {}]   ;;  %s1164_s7 = inlined_call_operand.hbm [shape: f32[2,8,16], index: 7, kind: output, shape index: {}]  }
   0x1 LB: > { %s1018_s25 = sadd.s32 4294967295, %s962_s24   ;;  %p809_p0 = scmp.ge.s32.totalorder %s962_s24, 1  ;;  %s962_s24 = sphi %s1012_s24, %s18_s24  }
   0x2   : > { %p280_p1 = scmp.lt.s32.totalorder %s962_s24, 3 }
   0x4   : > { %p281_p2 = pnand %p809_p0, %p280_p1 }
   0x5   : > { %p329_p3 = scmp.lt.s32.totalorder (!%p281_p2), %s1018_s25, 1  ;;  %p819_p4 = scmp.ne.s32.totalorder (!%p281_p2), %s1018_s25, 0 }
   0x6   : > { %284 = sbr.rel (%p281_p2) target bundleno = 1384 (0x568), region = 48 }
   0xb   : > { %s330_s26 = scalar_select %p329_p3, %s1018_s25, 1 }
   0xd   : > { %s1024_s27 = sshll.u32 %s330_s26, 3  ;;  %s845_s28 = sshll.u32 %s330_s26, 4 }
   0xe   : > { %s333_s8 = scalar_lea.vmem %s1158_s1, %s1024_s27  ;;  %s1033_s11 = scalar_lea.vmem %s1159_s2, %s845_s28 }
   0xf   : > { %s1038_s14 = scalar_lea.vmem %s1160_s3, %s845_s28  ;;  %s816_s15 = sshll.u32 %s330_s26, 2 }
  0x10   : > { %s1043_s18 = scalar_lea.vmem %s1161_s4, %s816_s15  ;;  %s351_s21 = scalar_lea.vmem %s1162_s5, %s1024_s27 }
  0x11   : > { %s355_s29 = scalar_lea.vmem %s1163_s6, %s1024_s27  ;;  %360 = sbr.rel (%p819_p4) target bundleno = 25 (0x19), region = 52 }
  0x16   : > { %v361_v0 = vld [vmem:[%s1157_s0] sm:$0xff]  ;;  %vm363_vm0 = vcmask 130048   ;;  %v362_v1 = vld [vmem:[%s1157_s0 + $0x8] sm:$0xff] }
  0x17   : > { %364 = vst.msk [vmem:[#allocation2] sm:$0xff] %vm363_vm0, %v361_v0 }
  0x18   : > { %365 = vst.msk [vmem:[#allocation2 + $0x8] sm:$0xff] %vm363_vm0, %v362_v1 }
  0x19 PF: > { %s964_s10 = smov 1   ;;  %vm381_vm1 = vcmask 7168   ;;  %vm383_vm2 = vcmask 138240   ;;  %s965_s12 = smov 127   ;;  %vm403_vm3 = vcmask 1043456   ;;  %vm967_vm4 = vmmov 1  }
  0x1a   : > { %s966_s13 = smov 126   ;;  %vm824_vm5 = vmpackc.low %vm967_vm4, %vm383_vm2  ;;  %v847_v25 = vld [vmem:[%s333_s8] sm:$0xff]  ;;  %vm399_vm6 = vcmask 195584   ;;  %vm453_vm7 = vcmask 130048   ;;  %v968_v47 = vmov 0   ;;  %vm583_vm15 = vcmask 392192  }
  0x1b   : > { %885 = vset.pattern.permute.xlu2 %v968_v47  ;;  %887 = vset.pattern.permute.xlu0 %v968_v47  ;;  %vm832_vm14 = vmpackc.low %vm383_vm2, %vm383_vm2  ;;  %s703_s22 = sshll.u32 %s1164_s7, 4  ;;  %p852_p5 = scmp.eq.s32.totalorder %s1018_s25, 1  ;;  %s704_s22 = int_to_ptr.hbm [resolvable:$true] %s703_s22 }
  0x1c   : > { %886 = vset.pattern.permute.xlu1 %v968_v47  ;;  %s970_s27 = smov 128   ;;  %s971_s23 = smov 8  }
  0x1e   : > { %v1060_v2 = vld [vmem:[#allocation2] sm:$0xff] }
  0x1f   : > { %v1062_v3 = vld [vmem:[#allocation2 + $0x8] sm:$0xff] }
  0x20   : > { %v870_v4 = vpack.i.bf16 %v1062_v3, %v1060_v2 }
  0x22   : > { %871 = vrot.lane.b32.xlu0 %v870_v4, %s964_s10 }
  0x94   : > { %v872_v5 = vpop.permute.xlu0 %871 }
  0x95   : > { %v874_v6 = vunpack.i.h.bf16 %v872_v5  ;;  %v873_v7 = vunpack.i.l.bf16 %v872_v5 }
  0x97   : > { %v382_v8 = vsel %vm381_vm1, 0.0, %v873_v7  ;;  %v425_v9 = vsel %vm381_vm1, 0.0, %v874_v6 }
  0x98   : > { %v384_v10 = vsel %vm383_vm2, %v382_v8, 0.0  ;;  %v426_v11 = vsel %vm383_vm2, %v425_v9, 0.0 }
  0x99   : > { %v880_v12 = vpack.i.bf16 %v426_v11, %v384_v10 }
  0x9b   : > { %881 = vrot.lane.b32.xlu1 %v880_v12, %s965_s12  ;;  %876 = vrot.lane.b32.xlu0 %v880_v12, %s966_s13  ;;  %v373_v12 = vld [vmem:[%s1038_s14] sm:$0xff] }
 0x10d   : > { %v877_v13 = vpop.permute.xlu0 %876  ;;  %v882_v14 = vpop.permute.xlu1 %881 }
 0x10e   : > { %v879_v15 = vunpack.i.h.bf16 %v877_v13  ;;  %v878_v16 = vunpack.i.l.bf16 %v877_v13  ;;  %v884_v19 = vunpack.i.h.bf16 %v882_v14  ;;  %v883_v20 = vunpack.i.l.bf16 %v882_v14 }
 0x110   : > { %v393_v17 = vpack.c.bf16 %v878_v16, %v878_v16  ;;  %v435_v18 = vpack.c.bf16 %v879_v15, %v879_v15  ;;  %v829_v23 = vpack.c.bf16 %v884_v19, %v425_v9  ;;  %v825_v24 = vpack.c.bf16 %v883_v20, %v382_v8  ;;  %v371_v8 = vld [vmem:[%s1033_s11] sm:$0xff]  ;;  %v372_v20 = vld [vmem:[%s1033_s11 + $0x8] sm:$0xff] }
 0x112   : > { %v405_v21 = vsel %vm403_vm3, %v393_v17, 0  ;;  %v437_v22 = vsel %vm403_vm3, %v435_v18, 0 }
 0x113   : > { %413 = vmatpush.bf16.msra.mxu0 %v405_v21  ;;  %445 = vmatpush.bf16.msra.mxu1 %v437_v22 }
 0x117   : > { %826 = vmatpush.bf16.msk.msra.mxu0 %vm824_vm5, %v825_v24  ;;  %830 = vmatpush.bf16.msk.msra.mxu1 %vm824_vm5, %v829_v23  ;;  %v374_v24 = vld [vmem:[%s1038_s14 + $0x8] sm:$0xff] }
 0x11a   : > { %827 = vmatmul.msk.bf16.vlgmr.msra.gmra.mxu0 %vm399_vm6, %v847_v25  ;;  %831 = vmatmul.msk.bf16.vlgmr.msra.gmra.mxu1 %vm399_vm6, %v847_v25 }
 0x197   : > { %v1079_v26 = vpop.f32.mrf.mxu0  ;;  %v1081_v27 = vpop.f32.mrf.mxu1 }
 0x198   : > { %v460_v28 = vsel %vm453_vm7, %v1081_v27, 0.0  ;;  %v454_v29 = vsel %vm453_vm7, %v1079_v26, 0.0  ;;  %v468_v34 = vmul.f32 %v1079_v26, %v1079_v26  ;;  %v470_v36 = vmul.f32 %v1081_v27, %v1081_v27 }
 0x199   : > { %461 = vadd.xlane.f32.xlu2 %v460_v28  ;;  %455 = vadd.xlane.f32.xlu1 %v454_v29 }
 0x19a   : > { %v472_v35 = vsel %vm453_vm7, %v468_v34, 0.0  ;;  %v478_v37 = vsel %vm453_vm7, %v470_v36, 0.0 }
 0x19f   : > { %v1087_v30 = vpop.f32.mrf.mxu0  ;;  %v1089_v31 = vpop.f32.mrf.mxu1 }
 0x1a0   : > { %v463_v32 = vsel %vm453_vm7, %v1089_v31, 0.0  ;;  %v457_v33 = vsel %vm453_vm7, %v1087_v30, 0.0  ;;  %v469_v38 = vmul.f32 %v1087_v30, %v1087_v30  ;;  %v471_v40 = vmul.f32 %v1089_v31, %v1089_v31 }
 0x1a1   : > { %464 = vadd.xlane.f32.xlu0 %v463_v32  ;;  %458 = vadd.xlane.f32.xlu2 %v457_v33 }
 0x1a2   : > { %v475_v39 = vsel %vm453_vm7, %v469_v38, 0.0  ;;  %v481_v41 = vsel %vm453_vm7, %v471_v40, 0.0 }
 0x1a9   : > { %473 = vadd.xlane.f32.xlu2 %v472_v35 }
 0x1b1   : > { %479 = vadd.xlane.f32.xlu2 %v478_v37 }
 0x1b9   : > { %476 = vadd.xlane.f32.xlu2 %v475_v39 }
 0x1c1   : > { %482 = vadd.xlane.f32.xlu2 %v481_v41 }
 0x20c   : > { %v462_v42 = vpop.xlane.xlu2 %461  ;;  %v456_v44 = vpop.xlane.xlu1 %455 }
 0x20d   : > { %v466_v46 = vadd.f32 %v462_v42, %v456_v44 }
 0x20f   : > { %v486_v48 = vmul.f32 0.03125, %v466_v46 }
 0x211   : > { %v490_v51 = vmul.f32 %v486_v48, %v486_v48 }
 0x214   : > { %v459_v43 = vpop.xlane.xlu2 %458  ;;  %v465_v55 = vpop.xlane.xlu0 %464 }
 0x215   : > { %v467_v57 = vadd.f32 %v465_v55, %v459_v43 }
 0x217   : > { %v487_v59 = vmul.f32 0.03125, %v467_v57 }
 0x219   : > { %v491_v0 = vmul.f32 %v487_v59, %v487_v59 }
 0x21c   : > { %v474_v45 = vpop.xlane.xlu2 %473 }
 0x224   : > { %v480_v49 = vpop.xlane.xlu2 %479 }
 0x225   : > { %v484_v50 = vadd.f32 %v480_v49, %v474_v45 }
 0x227   : > { %v488_v52 = vmul.f32 0.03125, %v484_v50 }
 0x229   : > { %v492_v53 = vsub.f32 %v488_v52, %v490_v51 }
 0x22b   : > { %v494_v54 = vadd.f32 1e-05, %v492_v53 }
 0x22c   : > { %v477_v56 = vpop.xlane.xlu2 %476 }
 0x22d   : > { %918 = vrsqrt.f32 %v494_v54  ;;  %vm502_vm9 = vweird.f32 %v494_v54 }
 0x233   : > { %v919_v58 = vpop.eup %918 }
 0x234   : > { %v497_v60 = vmul.f32 %v919_v58, %v494_v54  ;;  %v483_v61 = vpop.xlane.xlu2 %482  ;;  %vm503_vm8 = vweird.f32 %v919_v58 }
 0x235   : > { %v485_v62 = vadd.f32 %v483_v61, %v477_v56  ;;  %vm504_vm10 = vmor %vm502_vm9, %vm503_vm8 }
 0x236   : > { %v498_v63 = vmul.f32 %v919_v58, %v497_v60 }
 0x237   : > { %v489_v1 = vmul.f32 0.03125, %v485_v62 }
 0x238   : > { %v499_v4 = vmul.f32 0.5, %v498_v63 }
 0x239   : > { %v493_v5 = vsub.f32 %v489_v1, %v491_v0 }
 0x23a   : > { %v500_v6 = vsub.f32 1.5, %v499_v4 }
 0x23b   : > { %v495_v7 = vadd.f32 1e-05, %v493_v5 }
 0x23c   : > { %v501_v9 = vmul.f32 %v919_v58, %v500_v6 }
 0x23d   : > { %920 = vrsqrt.f32 %v495_v7  ;;  %vm512_vm12 = vweird.f32 %v495_v7 }
 0x23e   : > { %v505_v10 = vsel %vm504_vm10, %v919_v58, %v501_v9  ;;  %v370_v9 = vld [vmem:[%s1043_s18] sm:$0xf]  ;;  %s969_s18 = smov [#allocation2]  }
 0x23f   : > { %v516_v11 = vmul.f32 %v505_v10, %v371_v8  ;;  %s701_s19 = sshll.u32 %s969_s18, 4  ;;  %s702_s19 = int_to_ptr.vmem [resolvable:$true] %s701_s19 }
 0x241   : > { %524 = vperm.xlu2 %885, %v516_v11   ;;  %v518_v13 = vmul.f32 %v516_v11, %v486_v48 }
 0x243   : > { %v921_v14 = vpop.eup %920  ;;  %v520_v15 = vsub.f32 %v373_v12, %v518_v13 }
 0x244   : > { %v507_v16 = vmul.f32 %v921_v14, %v495_v7  ;;  %vm513_vm11 = vweird.f32 %v921_v14 }
 0x245   : > { %538 = vperm.xlu0 %887, %v520_v15   ;;  %vm514_vm13 = vmor %vm512_vm12, %vm513_vm11 }
 0x246   : > { %v508_v17 = vmul.f32 %v921_v14, %v507_v16 }
 0x248   : > { %v509_v18 = vmul.f32 0.5, %v508_v17 }
 0x24a   : > { %v510_v19 = vsub.f32 1.5, %v509_v18 }
 0x24c   : > { %v511_v21 = vmul.f32 %v921_v14, %v510_v19 }
 0x24e   : > { %v515_v22 = vsel %vm514_vm13, %v921_v14, %v511_v21 }
 0x24f   : > { %v517_v23 = vmul.f32 %v515_v22, %v372_v20 }
 0x251   : > { %529 = vperm.xlu1 %886, %v517_v23   ;;  %v519_v25 = vmul.f32 %v517_v23, %v487_v59 }
 0x253   : > { %v521_v28 = vsub.f32 %v374_v24, %v519_v25 }
 0x255   : > { %543 = vperm.xlu2 %885, %v521_v28  }
 0x29b   : > { %v525_v29 = vpop.permute.xlu2 %524 }
 0x29c   : > { %v532_v33 = vmul.f32 %v525_v29, %v1079_v26  ;;  %v534_v34 = vmul.f32 %v525_v29, %v1081_v27 }
 0x2af   : > { %v544_v40 = vpop.permute.xlu2 %543 }
 0x2b7   : > { %v539_v32 = vpop.permute.xlu0 %538 }
 0x2b8   : > { %v546_v36 = vadd.f32 %v539_v32, %v532_v33  ;;  %v548_v37 = vadd.f32 %v539_v32, %v534_v34 }
 0x2ba   : > { %v550_v43 = vmax.f32 %v546_v36, 0.0  ;;  %v552_v44 = vmax.f32 %v548_v37, 0.0 }
 0x2c3   : > { %v530_v35 = vpop.permute.xlu1 %529 }
 0x2c4   : > { %v533_v38 = vmul.f32 %v530_v35, %v1087_v30  ;;  %v535_v39 = vmul.f32 %v530_v35, %v1089_v31 }
 0x2c6   : > { %v547_v41 = vadd.f32 %v544_v40, %v533_v38  ;;  %v549_v42 = vadd.f32 %v544_v40, %v535_v39 }
 0x2c8   : > { %v551_v45 = vmax.f32 %v547_v41, 0.0  ;;  %v553_v46 = vmax.f32 %v549_v42, 0.0 }
 0x2ca   : > { %v893_v47 = vpack.i.bf16 %v553_v46, %v552_v44  ;;  %v888_v48 = vpack.i.bf16 %v551_v45, %v550_v43 }
 0x2cc   : > { %894 = vrot.lane.b32.xlu2 %v893_v47, %s964_s10  ;;  %889 = vrot.lane.b32.xlu1 %v888_v48, %s964_s10  ;;  %v375_v48 = vld [vmem:[%s351_s21] sm:$0xff] }
 0x326   : > { %v895_v26 = vpop.permute.xlu2 %894 }
 0x327   : > { %v897_v27 = vunpack.i.h.bf16 %v895_v26  ;;  %v896_v49 = vunpack.i.l.bf16 %v895_v26 }
 0x329   : > { %v609_v30 = vsel %vm381_vm1, 0.0, %v897_v27  ;;  %v608_v31 = vsel %vm381_vm1, 0.0, %v896_v49 }
 0x32a   : > { %v611_v50 = vsel %vm383_vm2, %v609_v30, 0.0  ;;  %v610_v51 = vsel %vm383_vm2, %v608_v31, 0.0  ;;  %v837_v52 = vpack.c.bf16 %v609_v30, %v608_v31  ;;  %v376_v30 = vld [vmem:[%s355_s29] sm:$0xff] }
 0x32b   : > { %v903_v53 = vpack.i.bf16 %v611_v50, %v610_v51 }
 0x32d   : > { %904 = vrot.lane.b32.xlu2 %v903_v53, %s966_s13 }
 0x335   : > { %914 = vrot.lane.b32.xlu2 %v903_v53, %s965_s12 }
 0x33e   : > { %v890_v54 = vpop.permute.xlu1 %889 }
 0x33f   : > { %v892_v55 = vunpack.i.h.bf16 %v890_v54  ;;  %v891_v56 = vunpack.i.l.bf16 %v890_v54 }
 0x341   : > { %v563_v57 = vsel %vm381_vm1, 0.0, %v892_v55  ;;  %v562_v58 = vsel %vm381_vm1, 0.0, %v891_v56 }
 0x342   : > { %v565_v59 = vsel %vm383_vm2, %v563_v57, 0.0  ;;  %v564_v60 = vsel %vm383_vm2, %v562_v58, 0.0  ;;  %v833_v61 = vpack.c.bf16 %v563_v57, %v562_v58 }
 0x343   : > { %v898_v62 = vpack.i.bf16 %v565_v59, %v564_v60 }
 0x345   : > { %899 = vrot.lane.b32.xlu1 %v898_v62, %s966_s13 }
 0x34d   : > { %909 = vrot.lane.b32.xlu1 %v898_v62, %s965_s12 }
 0x387   : > { %v905_v63 = vpop.permute.xlu2 %904 }
 0x388   : > { %v907_v0 = vunpack.i.h.bf16 %v905_v63  ;;  %v906_v1 = vunpack.i.l.bf16 %v905_v63 }
 0x38a   : > { %v628_v4 = vpack.c.bf16 %v907_v0, %v906_v1 }
 0x38c   : > { %634 = vmatpush.bf16.msra.mxu3 %v628_v4 }
 0x38f   : > { %v915_v5 = vpop.permute.xlu2 %914 }
 0x390   : > { %v917_v6 = vunpack.i.h.bf16 %v915_v5  ;;  %v916_v7 = vunpack.i.l.bf16 %v915_v5 }
 0x392   : > { %v627_v8 = vpack.c.bf16 %v917_v6, %v916_v7 }
 0x394   : > { %635 = vmatpush.bf16.msra.mxu3 %v627_v8 }
 0x398   : > { %838 = vmatpush.bf16.msk.msra.mxu3 %vm832_vm14, %v837_v52 }
 0x39b   : > { %839 = vmatmul.msk.bf16.vlgmr.msra.gmra.mxu3 %vm583_vm15, %v370_v9 }
 0x3b7   : > { %v900_v10 = vpop.permute.xlu1 %899 }
 0x3b8   : > { %v902_v11 = vunpack.i.h.bf16 %v900_v10  ;;  %v901_v12 = vunpack.i.l.bf16 %v900_v10 }
 0x3ba   : > { %v582_v13 = vpack.c.bf16 %v902_v11, %v901_v12 }
 0x3bc   : > { %592 = vmatpush.bf16.msra.mxu2 %v582_v13 }
 0x3bf   : > { %v910_v14 = vpop.permute.xlu1 %909 }
 0x3c0   : > { %v912_v15 = vunpack.i.h.bf16 %v910_v14  ;;  %v911_v16 = vunpack.i.l.bf16 %v910_v14 }
 0x3c2   : > { %v581_v17 = vpack.c.bf16 %v912_v15, %v911_v16 }
 0x3c4   : > { %593 = vmatpush.bf16.msra.mxu2 %v581_v17 }
 0x3c8   : > { %834 = vmatpush.bf16.msk.msra.mxu2 %vm832_vm14, %v833_v61 }
 0x3cb   : > { %835 = vmatmul.msk.bf16.vlgmr.msra.gmra.mxu2 %vm583_vm15, %v370_v9 }
 0x41e   : > { %v638_v18 = vpop.f32.mrf.mxu3 }
 0x41f   : > { %v645_v19 = vsel %vm453_vm7, %v638_v18, 0.0  ;;  %v650_v25 = vmul.f32 %v638_v18, %v638_v18 }
 0x420   : > { %646 = vadd.xlane.f32.xlu1 %v645_v19 }
 0x421   : > { %v654_v28 = vsel %vm453_vm7, %v650_v25, 0.0 }
 0x426   : > { %v640_v20 = vpop.f32.mrf.mxu3 }
 0x44e   : > { %v596_v21 = vpop.f32.mrf.mxu2 }
 0x44f   : > { %v642_v22 = vsel %vm453_vm7, %v596_v21, 0.0  ;;  %v649_v23 = vmul.f32 %v596_v21, %v596_v21 }
 0x450   : > { %643 = vadd.xlane.f32.xlu0 %v642_v22 }
 0x451   : > { %v651_v24 = vsel %vm453_vm7, %v649_v23, 0.0 }
 0x452   : > { %652 = vadd.xlane.f32.xlu2 %v651_v24 }
 0x456   : > { %v598_v29 = vpop.f32.mrf.mxu2 }
 0x458   : > { %655 = vadd.xlane.f32.xlu0 %v654_v28 }
 0x493   : > { %v647_v32 = vpop.xlane.xlu1 %646 }
 0x4c3   : > { %v644_v33 = vpop.xlane.xlu0 %643 }
 0x4c4   : > { %v648_v34 = vadd.f32 %v647_v32, %v644_v33 }
 0x4c5   : > { %v653_v36 = vpop.xlane.xlu2 %652 }
 0x4c6   : > { %v658_v35 = vmul.f32 0.03125, %v648_v34 }
 0x4c8   : > { %v660_v39 = vmul.f32 %v658_v35, %v658_v35 }
 0x4cb   : > { %v656_v37 = vpop.xlane.xlu0 %655 }
 0x4cc   : > { %v657_v38 = vadd.f32 %v656_v37, %v653_v36 }
 0x4ce   : > { %v659_v40 = vmul.f32 0.03125, %v657_v38 }
 0x4d0   : > { %v661_v41 = vsub.f32 %v659_v40, %v660_v39 }
 0x4d2   : > { %v662_v42 = vadd.f32 1e-05, %v661_v41 }
 0x4d4   : > { %922 = vrsqrt.f32 %v662_v42  ;;  %vm669_vm1 = vweird.f32 %v662_v42 }
 0x4da   : > { %v923_v43 = vpop.eup %922 }
 0x4db   : > { %v664_v44 = vmul.f32 %v923_v43, %v662_v42  ;;  %vm670_vm0 = vweird.f32 %v923_v43 }
 0x4dc   : > { %vm671_vm2 = vmor %vm669_vm1, %vm670_vm0 }
 0x4dd   : > { %v665_v45 = vmul.f32 %v923_v43, %v664_v44 }
 0x4df   : > { %v666_v46 = vmul.f32 0.5, %v665_v45 }
 0x4e1   : > { %v667_v47 = vsub.f32 1.5, %v666_v46 }
 0x4e3   : > { %v668_v26 = vmul.f32 %v923_v43, %v667_v47 }
 0x4e5   : > { %v672_v27 = vsel %vm671_vm2, %v923_v43, %v668_v26 }
 0x4e6   : > { %v673_v49 = vmul.f32 %v672_v27, %v375_v48 }
 0x4e8   : > { %678 = vperm.xlu1 %886, %v673_v49   ;;  %v674_v31 = vmul.f32 %v673_v49, %v658_v35 }
 0x4ea   : > { %v675_v50 = vsub.f32 %v376_v30, %v674_v31 }
 0x4ec   : > { %685 = vperm.xlu2 %885, %v675_v50  }
 0x546   : > { %v686_v54 = vpop.permute.xlu2 %685 }
 0x55a   : > { %v679_v51 = vpop.permute.xlu1 %678 }
 0x55b   : > { %v681_v52 = vmul.f32 %v679_v51, %v596_v21  ;;  %v682_v53 = vmul.f32 %v679_v51, %v638_v18 }
 0x55d   : > { %v688_v55 = vadd.f32 %v686_v54, %v681_v52  ;;  %v689_v56 = vadd.f32 %v686_v54, %v682_v53 }
 0x55f   : > { %v690_v57 = vadd.f32 %v688_v55, %v1060_v2  ;;  %v691_v58 = vadd.f32 %v689_v56, %v1062_v3 }
 0x561   : > { %v692_v59 = vmax.f32 %v690_v57, 0.0  ;;  %v693_v60 = vmax.f32 %v691_v58, 0.0 }
 0x563   : > { %694 = vst.msk [vmem:[#allocation2] sm:$0xff] %vm453_vm7, %v692_v59 }
 0x564   : > { %695 = vst.msk [vmem:[#allocation2 + $0x8] sm:$0xff] %vm453_vm7, %v693_v60 }
 0x565   : > { %849 = dma.vmem_to_hbm [thread:$0]  (%p852_p5), %s702_s19, 256, %s704_s22, [#allocation3], %s970_s27, %s970_s27, %s971_s23  }
 0x566   : > { %957 = dma.done.wait (%p852_p5), [#allocation3], 256  }
 0x567   : > { %959 = vsyncadd (%p852_p5), [#allocation3], 4294967040 }
 0x568 PF: > { %s18_s24 = sadd.s32 1, %s962_s24  }
 0x569   : > { %p15_p6 = scmp.ge.s32.totalorder %s18_s24, 4  }
 0x56b   :  { %17 = sbr.rel (!%p15_p6) target bundleno = 1 (0x1), region = 94 }
 0x570   :  { %720 = vsyncpa [#allocation3], 1 }
 0x571   :  { %722 = vsyncpa [#allocation3 + $0x1], 1 }

</bundles_post_ra>
